<compile_context>
chip_gen: v6e
topology: v6e:2x2x1
jax: 0.10.0
libtpu: 0.0.40
codegen_flags: <defaults>
</compile_context>

<pallas_src>
import jax
import jax.numpy as jnp
import numpy as np
from jax.experimental import pallas as pl
from jax.experimental.pallas import tpu as pltpu

_COMPUTE_DTYPE = jnp.bfloat16   # matmul operand dtype (f32 accumulation)


# --------------------------------------------------------------------------
# Pallas kernels
# --------------------------------------------------------------------------
def _matmul_shift_relu_kernel(x_ref, w_ref, shift_ref, out_ref):
    """conv (as im2col matmul, BN scale pre-folded into w) + shift + ReLU."""
    y = jnp.dot(x_ref[...], w_ref[...], preferred_element_type=jnp.float32)
    y = y + shift_ref[...]
    out_ref[...] = jnp.maximum(y, 0.0).astype(out_ref.dtype)


def _matmul2_shift_relu_kernel(x_ref, w_ref, xs_ref, ws_ref, shift_ref, out_ref):
    """conv2 matmul + fused 1x1-projection-shortcut matmul + shift + ReLU."""
    y = jnp.dot(x_ref[...], w_ref[...], preferred_element_type=jnp.float32)
    y = y + jnp.dot(xs_ref[...], ws_ref[...], preferred_element_type=jnp.float32)
    y = y + shift_ref[...]
    out_ref[...] = jnp.maximum(y, 0.0).astype(out_ref.dtype)


def _matmul_res_shift_relu_kernel(x_ref, w_ref, res_ref, shift_ref, out_ref):
    """conv2 matmul + identity residual add + shift + ReLU."""
    y = jnp.dot(x_ref[...], w_ref[...], preferred_element_type=jnp.float32)
    y = y + res_ref[...].astype(jnp.float32)
    y = y + shift_ref[...]
    out_ref[...] = jnp.maximum(y, 0.0).astype(out_ref.dtype)


# --------------------------------------------------------------------------
# Helpers (glue in plain JAX: padding, im2col slab, BN folding)
# --------------------------------------------------------------------------
def _round_up(x, m):
    return (x + m - 1) // m * m


def _choose_tile(M, tm_max=512):
    """Row tile (multiple of 8) and padded row count; keep >=2 grid steps."""
    if M >= 2 * tm_max:
        tm = tm_max
    else:
        tm = max(8, _round_up((M + 1) // 2, 8))
    return tm, _round_up(M, tm)


def _pad_rows(a, m_pad):
    m = a.shape[0]
    if m_pad == m:
        return a
    return jnp.pad(a, ((0, m_pad - m), (0, 0)))


def _im2col_3x3(x_nhwc, stride):
    """Single (M, 9*C) im2col slab for a 3x3 conv with padding=1."""
    N, H, W, C = x_nhwc.shape
    Ho = (H - 1) // stride + 1
    Wo = (W - 1) // stride + 1
    xp = jnp.pad(x_nhwc, ((0, 0), (1, 1), (1, 1), (0, 0)))
    taps = []
    for kh in range(3):
        for kw in range(3):
            taps.append(xp[:, kh:kh + stride * (Ho - 1) + 1:stride,
                            kw:kw + stride * (Wo - 1) + 1:stride, :])
    cols = jnp.concatenate(taps, axis=-1).reshape(N * Ho * Wo, 9 * C)
    return cols, (N, Ho, Wo)


def fold_bn(gamma, beta, mean, var, eps=1e-5):
    scale = gamma / jnp.sqrt(var + eps)
    shift = beta - mean * scale
    return scale, shift


# --------------------------------------------------------------------------
# Pallas-call wrappers
# --------------------------------------------------------------------------
def conv3x3_bn_relu(x_nhwc, w_hwio, scale, shift, *, stride, out_dtype,
                    tm_max=512):
    """3x3 conv (pad=1) + folded BN + ReLU. One matmul kernel, no residual."""
    cols, (N, Ho, Wo) = _im2col_3x3(x_nhwc, stride)
    M, K = cols.shape
    Cout = w_hwio.shape[-1]
    tm, M_pad = _choose_tile(M, tm_max)

    cols = _pad_rows(cols, M_pad).astype(_COMPUTE_DTYPE)
    w = (w_hwio.reshape(K, Cout) * scale[None, :]).astype(_COMPUTE_DTYPE)
    shift2d = shift.reshape(1, Cout).astype(jnp.float32)

    out = pl.pallas_call(
        _matmul_shift_relu_kernel,
        out_shape=jax.ShapeDtypeStruct((M_pad, Cout), out_dtype),
        grid=(M_pad // tm,),
        in_specs=[
            pl.BlockSpec((tm, K), lambda i: (i, 0)),
            pl.BlockSpec((K, Cout), lambda i: (0, 0)),
            pl.BlockSpec((1, Cout), lambda i: (0, 0)),
        ],
        out_specs=pl.BlockSpec((tm, Cout), lambda i: (i, 0)),
        compiler_params=pltpu.CompilerParams(
            dimension_semantics=("parallel",)),
    )(cols, w, shift2d)
    return out[:M].reshape(N, Ho, Wo, Cout)


def conv3x3_bn_proj_shortcut_relu(x_mid_nhwc, w2_hwio, scale2, shift2,
                                  x_in_nhwc, ws, scale_s, shift_s, *,
                                  stride_s, out_dtype, tm_max=512):
    """conv2 (3x3 stride 1) + BN2 + fused (1x1 stride-s conv + BN) shortcut + ReLU."""
    cols, (N, Ho, Wo) = _im2col_3x3(x_mid_nhwc, 1)
    M, K = cols.shape
    Cout = w2_hwio.shape[-1]
    Cin = x_in_nhwc.shape[-1]
    xs = x_in_nhwc[:, ::stride_s, ::stride_s, :].reshape(M, Cin)

    tm, M_pad = _choose_tile(M, tm_max)
    cols = _pad_rows(cols, M_pad).astype(_COMPUTE_DTYPE)
    xs = _pad_rows(xs, M_pad).astype(_COMPUTE_DTYPE)
    w2 = (w2_hwio.reshape(K, Cout) * scale2[None, :]).astype(_COMPUTE_DTYPE)
    wsm = (ws.reshape(Cin, Cout) * scale_s[None, :]).astype(_COMPUTE_DTYPE)
    shift2d = (shift2 + shift_s).reshape(1, Cout).astype(jnp.float32)

    out = pl.pallas_call(
        _matmul2_shift_relu_kernel,
        out_shape=jax.ShapeDtypeStruct((M_pad, Cout), out_dtype),
        grid=(M_pad // tm,),
        in_specs=[
            pl.BlockSpec((tm, K), lambda i: (i, 0)),
            pl.BlockSpec((K, Cout), lambda i: (0, 0)),
            pl.BlockSpec((tm, Cin), lambda i: (i, 0)),
            pl.BlockSpec((Cin, Cout), lambda i: (0, 0)),
            pl.BlockSpec((1, Cout), lambda i: (0, 0)),
        ],
        out_specs=pl.BlockSpec((tm, Cout), lambda i: (i, 0)),
        compiler_params=pltpu.CompilerParams(
            dimension_semantics=("parallel",)),
    )(cols, w2, xs, wsm, shift2d)
    return out[:M].reshape(N, Ho, Wo, Cout)


def conv3x3_bn_add_identity_relu(x_mid_nhwc, w2_hwio, scale2, shift2,
                                 res_nhwc, *, out_dtype, tm_max=512):
    """conv2 (3x3 stride 1) + BN2 + identity residual add + ReLU."""
    cols, (N, Ho, Wo) = _im2col_3x3(x_mid_nhwc, 1)
    M, K = cols.shape
    Cout = w2_hwio.shape[-1]
    res = res_nhwc.reshape(M, Cout)

    tm, M_pad = _choose_tile(M, tm_max)
    cols = _pad_rows(cols, M_pad).astype(_COMPUTE_DTYPE)
    res = _pad_rows(res, M_pad)                     # keep input dtype for the add
    w2 = (w2_hwio.reshape(K, Cout) * scale2[None, :]).astype(_COMPUTE_DTYPE)
    shift2d = shift2.reshape(1, Cout).astype(jnp.float32)

    out = pl.pallas_call(
        _matmul_res_shift_relu_kernel,
        out_shape=jax.ShapeDtypeStruct((M_pad, Cout), out_dtype),
        grid=(M_pad // tm,),
        in_specs=[
            pl.BlockSpec((tm, K), lambda i: (i, 0)),
            pl.BlockSpec((K, Cout), lambda i: (0, 0)),
            pl.BlockSpec((tm, Cout), lambda i: (i, 0)),
            pl.BlockSpec((1, Cout), lambda i: (0, 0)),
        ],
        out_specs=pl.BlockSpec((tm, Cout), lambda i: (i, 0)),
        compiler_params=pltpu.CompilerParams(
            dimension_semantics=("parallel",)),
    )(cols, w2, res, shift2d)
    return out[:M].reshape(N, Ho, Wo, Cout)


# --------------------------------------------------------------------------
# ResidualBlock forward (NCHW in / NCHW out, like the PyTorch module)
# --------------------------------------------------------------------------
def residual_block_forward(x_nchw, p, *, stride):
    x = jnp.transpose(x_nchw, (0, 2, 3, 1))             # NCHW -> NHWC
    Cin = x.shape[-1]
    Cout = p["w1"].shape[-1]

    scale1, shift1 = fold_bn(p["g1"], p["b1"], p["m1"], p["v1"])
    scale2, shift2 = fold_bn(p["g2"], p["b2"], p["m2"], p["v2"])

    # conv1 + bn1 + relu (no residual stream; bf16 intermediate halves HBM bytes)
    out1 = conv3x3_bn_relu(x, p["w1"], scale1, shift1, stride=stride,
                           out_dtype=_COMPUTE_DTYPE)

    if stride != 1 or Cin != Cout:
        scale_s, shift_s = fold_bn(p["gs"], p["bs"], p["ms"], p["vs"])
        out2 = conv3x3_bn_proj_shortcut_relu(
            out1, p["w2"], scale2, shift2,
            x, p["ws"], scale_s, shift_s,
            stride_s=stride, out_dtype=x.dtype)
    else:
        out2 = conv3x3_bn_add_identity_relu(
            out1, p["w2"], scale2, shift2, x, out_dtype=x.dtype)

    return jnp.transpose(out2, (0, 3, 1, 2))             # NHWC -> NCHW


# --------------------------------------------------------------------------
# Pure-JAX reference (correctness check only)
# --------------------------------------------------------------------------
def reference_forward(x_nchw, p, *, stride, eps=1e-5):
    x = jnp.transpose(x_nchw, (0, 2, 3, 1))
    Cin = x.shape[-1]
    Cout = p["w1"].shape[-1]

    def bn(y, g, b, m, v):
        return (y - m) / jnp.sqrt(v + eps) * g + b

    def conv(y, w, s, pad):
        return jax.lax.conv_general_dilated(
            y, w, (s, s), pad, dimension_numbers=("NHWC", "HWIO", "NHWC"))

    o = jax.nn.relu(bn(conv(x, p["w1"], stride, [(1, 1), (1, 1)]),
                       p["g1"], p["b1"], p["m1"], p["v1"]))
    o = bn(conv(o, p["w2"], 1, [(1, 1), (1, 1)]),
           p["g2"], p["b2"], p["m2"], p["v2"])
    if stride != 1 or Cin != Cout:
        sc = bn(conv(x, p["ws"], stride, [(0, 0), (0, 0)]),
                p["gs"], p["bs"], p["ms"], p["vs"])
    else:
        sc = x
    o = jax.nn.relu(o + sc)
    return jnp.transpose(o, (0, 3, 1, 2))


# --------------------------------------------------------------------------
# Main
# --------------------------------------------------------------------------
def make_params(key, Cin, Cout, with_shortcut):
    ks = jax.random.split(key, 6)

    def bn_params(k, c):
        k0, k1, k2, k3 = jax.random.split(k, 4)
        g = 1.0 + 0.1 * jax.random.normal(k0, (c,), jnp.float32)
        b = 0.1 * jax.random.normal(k1, (c,), jnp.float32)
        m = 0.1 * jax.random.normal(k2, (c,), jnp.float32)
        v = 0.5 + jax.random.uniform(k3, (c,), jnp.float32)
        return g, b, m, v

    p = {}
    p["w1"] = 0.1 * jax.random.normal(ks[0], (3, 3, Cin, Cout), jnp.float32)
    p["g1"], p["b1"], p["m1"], p["v1"] = bn_params(ks[1], Cout)
    p["w2"] = 0.1 * jax.random.normal(ks[2], (3, 3, Cout, Cout), jnp.float32)
    p["g2"], p["b2"], p["m2"], p["v2"] = bn_params(ks[3], Cout)
    if with_shortcut:
        p["ws"] = 0.1 * jax.random.normal(ks[4], (1, 1, Cin, Cout), jnp.float32)
        p["gs"], p["bs"], p["ms"], p["vs"] = bn_params(ks[5], Cout)
    return p


if __name__ == "__main__":
    key = jax.random.PRNGKey(0)
    kx, kp1, kp2 = jax.random.split(key, 3)

    N, Cin, H, W = 2, 16, 16, 16
    x = jax.random.normal(kx, (N, Cin, H, W), jnp.float32)   # NCHW, like PyTorch

    # Tolerances account for bf16 matmul operands (f32 accumulation).

    # Case 1: projected shortcut path (stride=2, Cin=16 -> Cout=32).
    p1 = make_params(kp1, Cin, 32, with_shortcut=True)
    out1 = jax.block_until_ready(residual_block_forward(x, p1, stride=2))
    ref1 = jax.block_until_ready(reference_forward(x, p1, stride=2))
    np.testing.assert_allclose(np.asarray(out1), np.asarray(ref1),
                               rtol=5e-2, atol=1e-1)

    # Case 2: identity shortcut path (stride=1, Cin == Cout).
    p2 = make_params(kp2, Cin, Cin, with_shortcut=False)
    out2 = jax.block_until_ready(residual_block_forward(x, p2, stride=1))
    ref2 = jax.block_until_ready(reference_forward(x, p2, stride=1))
    np.testing.assert_allclose(np.asarray(out2), np.asarray(ref2),
                               rtol=5e-2, atol=1e-1)

    print("KERNEL_OK")
</pallas_src>

<mosaic_0001>
module attributes {stable_mosaic.version = 11 : i64} {
  func.func @_matmul_shift_relu_kernel(%arg0: i32, %arg1: memref<64x144xbf16, #tpu.memory_space<vmem>>, %arg2: memref<144x32xbf16, #tpu.memory_space<vmem>>, %arg3: memref<1x32xf32, #tpu.memory_space<vmem>>, %arg4: memref<64x32xbf16, #tpu.memory_space<vmem>>) attributes {dimension_semantics = [#tpu.dimension_semantics<parallel>], iteration_bounds = array<i64: 2>, scalar_prefetch = 0 : i64, scratch_operands = 0 : i64, tpu.core_type = #tpu.core_type<tc>, window_params = [{transform_indices = @transform_0, window_bounds = array<i64: 64, 144>}, {pipeline_mode = #tpu.pipeline_mode<synchronous>, transform_indices = @transform_1, window_bounds = array<i64: 144, 32>}, {pipeline_mode = #tpu.pipeline_mode<synchronous>, transform_indices = @transform_2, window_bounds = array<i64: 1, 32>}, {transform_indices = @transform_3, window_bounds = array<i64: 64, 32>}]} {
    %c0 = arith.constant 0 : index
    %c0_0 = arith.constant 0 : index
    %0 = vector.load %arg1[%c0, %c0_0] : memref<64x144xbf16, #tpu.memory_space<vmem>>, vector<64x144xbf16>
    %c0_1 = arith.constant 0 : index
    %c0_2 = arith.constant 0 : index
    %1 = vector.load %arg2[%c0_1, %c0_2] : memref<144x32xbf16, #tpu.memory_space<vmem>>, vector<144x32xbf16>
    %cst = arith.constant dense<0.000000e+00> : vector<64x32xf32>
    %2 = tpu.matmul %0, %1, %cst {dimension_numbers = #tpu.dot_dimension_numbers<[1], [0], [0], [1], [0, 0, 1, 1], [], []>} : vector<64x144xbf16>, vector<144x32xbf16>, vector<64x32xf32> -> vector<64x32xf32>
    %c0_3 = arith.constant 0 : index
    %c0_4 = arith.constant 0 : index
    %3 = vector.load %arg3[%c0_3, %c0_4] : memref<1x32xf32, #tpu.memory_space<vmem>>, vector<1x32xf32>
    %4 = vector.broadcast %3 : vector<1x32xf32> to vector<64x32xf32>
    %5 = arith.addf %2, %4 : vector<64x32xf32>
    %cst_5 = arith.constant 0.000000e+00 : f32
    %6 = vector.broadcast %cst_5 : f32 to vector<64x32xf32>
    %7 = arith.maximumf %5, %6 : vector<64x32xf32>
    %8 = arith.truncf %7 : vector<64x32xf32> to vector<64x32xbf16>
    %c0_6 = arith.constant 0 : index
    %c0_7 = arith.constant 0 : index
    %9 = vector.load %arg4[%c0_6, %c0_7] : memref<64x32xbf16, #tpu.memory_space<vmem>>, vector<64x32xbf16>
    tpu.vector_store %arg4[%c0_6, %c0_7], %8 {strides = array<i32>} : memref<64x32xbf16, #tpu.memory_space<vmem>>, vector<64x32xbf16>,
    return
  }
  func.func @transform_0(%arg0: i32) -> (i32, i32) {
    %c0_i32 = arith.constant 0 : i32
    %c0_i32_0 = arith.constant 0 : i32
    return %arg0, %c0_i32 : i32, i32
  }
  func.func @transform_1(%arg0: i32) -> (i32, i32) {
    %c0_i32 = arith.constant 0 : i32
    %c0_i32_0 = arith.constant 0 : i32
    %c0_i32_1 = arith.constant 0 : i32
    return %c0_i32, %c0_i32_0 : i32, i32
  }
  func.func @transform_2(%arg0: i32) -> (i32, i32) {
    %c0_i32 = arith.constant 0 : i32
    %c0_i32_0 = arith.constant 0 : i32
    %c0_i32_1 = arith.constant 0 : i32
    return %c0_i32, %c0_i32_0 : i32, i32
  }
  func.func @transform_3(%arg0: i32) -> (i32, i32) {
    %c0_i32 = arith.constant 0 : i32
    %c0_i32_0 = arith.constant 0 : i32
    return %arg0, %c0_i32 : i32, i32
  }
}

</mosaic_0001>

<bundles_post_ra>
// kernel: tpu_custom_call.1
= control target key start
LH: loop header
LB: loop body
LE: loop exit
PB: predicated region body
PF: predicated region fallthrough
CT: control target
= control target key end

     0   :  { %s612_s12 = smov 0   ;;  %s695_s0 = inlined_call_operand.vmem [shape: bf16[128,144], index: 0, kind: input, shape index: {}]   ;;  %s696_s1 = inlined_call_operand.vmem [shape: bf16[144,32], index: 1, kind: input, shape index: {}]   ;;  %s697_s2 = inlined_call_operand.vmem [shape: f32[1,32], index: 2, kind: input, shape index: {}]   ;;  %s698_s3 = inlined_call_operand.vmem [shape: bf16[128,32], index: 3, kind: output, shape index: {}]  }
   0x1 LB: > { %s484_s13 = sadd.s32 4294967295, %s589_s12   ;;  %p488_p0 = scmp.ge.s32.totalorder %s589_s12, 1  ;;  %s589_s12 = sphi %s612_s12, %s13_s12  }
   0x2   : > { %p139_p1 = scmp.lt.s32.totalorder %s589_s12, 3 }
   0x4   : > { %p140_p2 = pnand %p488_p0, %p139_p1 }
   0x5   : > { %s489_s16 = sshll.u32 (!%p140_p2), %s484_s13, 3 }
   0x6   : > { %143 = sbr.rel (%p140_p2) target bundleno = 260 (0x104), region = 32  ;;  %p165_p3 = scmp.lt.s32.totalorder (!%p140_p2), %s489_s16, 15 }
   0xb   : > { %v562_v0 = vld [vmem:[%s696_s1 + $0x38] sm:$0xff]   ;;  %v591_v1 = vmov 0   ;;  %v563_v2 = vld [vmem:[%s696_s1 + $0x30] sm:$0xff]   ;;  %s700_s16 = smov (!%p165_p3, %s489_s16), 15  ;;  %v564_v3 = vld [vmem:[%s696_s1 + $0x28] sm:$0xff]   ;;  %vm301_vm0 = vcmask 130048  }
   0xc   : > { %314 = vmatprep.subr.bf16.mxu0 %v591_v1  ;;  %535 = vmatprep.subr.bf16.mxu1 %v591_v1  ;;  %s526_s21 = sshll.u32 %s700_s16, 3  ;;  %v565_v4 = vld [vmem:[%s696_s1 + $0x20] sm:$0xff]   ;;  %v566_v7 = vld [vmem:[%s696_s1 + $0x18] sm:$0xff]   ;;  %v567_v8 = vld [vmem:[%s696_s1 + $0x10] sm:$0xff]   ;;  %s493_s13 = sshll.u32 %s700_s16, 2  ;;  %vm419_vm1 = vcmask 257024  }
   0xd   : > { %315 = vmatpush1.bf16.msra.mxu0 %v562_v0  ;;  %544 = vmatpush1.bf16.msra.mxu1 %v562_v0  ;;  %s635_s24 = scalar_lea.vmem %s695_s0, %s526_s21  ;;  %v568_v9 = vld [vmem:[%s696_s1 + $0x8] sm:$0xff]   ;;  %v569_v10 = vld [vmem:[%s696_s1] sm:$0xff]   ;;  %s674_s17 = scalar_lea.vmem %s698_s3, %s493_s13 }
   0xe   : > { %316 = vmatprep.subr.bf16.mxu0 %v591_v1  ;;  %536 = vmatprep.subr.bf16.mxu1 %v591_v1  ;;  %v573_v5 = vld [vmem:[%s635_s24 + $0x4] ss:$8 sps:$4 sm:$0xff]   ;;  %v571_v12 = vld [vmem:[%s635_s24] ss:$8 sps:$4 sm:$0xff]   ;;  %v577_v14 = vld [vmem:[%s635_s24 + $0x14] ss:$8 sps:$4 sm:$0xff]  }
   0xf   : > { %v576_v6 = vld [vmem:[%s635_s24 + $0x24] ss:$8 sps:$4 sm:$0xff]   ;;  %512 = vmatprep.mubr.msk.bf16.mxu0 %vm301_vm0, %v573_v5  ;;  %v574_v13 = vld [vmem:[%s635_s24 + $0x20] ss:$8 sps:$4 sm:$0xff]   ;;  %v579_v15 = vld [vmem:[%s635_s24 + $0x34] ss:$8 sps:$4 sm:$0xff]  }
  0x10   : > { %514 = vmatprep.mubr.msk.bf16.mxu1 %vm301_vm0, %v576_v6  ;;  %v570_v11 = vld [vmem:[%s696_s1 + $0x40] sm:$0xff]   ;;  %v581_v16 = vld [vmem:[%s635_s24 + $0x10] ss:$8 sps:$4 sm:$0xff]  }
  0x11   : > { %317 = vmatpush1.bf16.msra.mxu0 %v563_v2  ;;  %545 = vmatpush1.bf16.msra.mxu1 %v563_v2  ;;  %v582_v17 = vld [vmem:[%s635_s24 + $0x30] ss:$8 sps:$4 sm:$0xff]   ;;  %v494_v18 = vld [vmem:[%s697_s2] ss:$0 sm:$0xff] }
  0x12   : > { %318 = vmatprep.subr.bf16.mxu0 %v591_v1  ;;  %537 = vmatprep.subr.bf16.mxu1 %v591_v1 }
  0x15   : > { %319 = vmatpush1.bf16.msra.mxu0 %v564_v3  ;;  %546 = vmatpush1.bf16.msra.mxu1 %v564_v3 }
  0x16   : > { %320 = vmatprep.subr.bf16.mxu0 %v591_v1  ;;  %538 = vmatprep.subr.bf16.mxu1 %v591_v1 }
  0x19   : > { %321 = vmatpush1.bf16.msra.mxu0 %v565_v4  ;;  %547 = vmatpush1.bf16.msra.mxu1 %v565_v4 }
  0x1a   : > { %322 = vmatprep.subr.bf16.mxu0 %v591_v1  ;;  %539 = vmatprep.subr.bf16.mxu1 %v591_v1 }
  0x1d   : > { %323 = vmatpush1.bf16.msra.mxu0 %v566_v7  ;;  %548 = vmatpush1.bf16.msra.mxu1 %v566_v7 }
  0x1e   : > { %324 = vmatprep.subr.bf16.mxu0 %v591_v1  ;;  %540 = vmatprep.subr.bf16.mxu1 %v591_v1 }
  0x21   : > { %325 = vmatpush1.bf16.msra.mxu0 %v567_v8  ;;  %549 = vmatpush1.bf16.msra.mxu1 %v567_v8 }
  0x22   : > { %326 = vmatprep.subr.bf16.mxu0 %v591_v1  ;;  %541 = vmatprep.subr.bf16.mxu1 %v591_v1 }
  0x25   : > { %327 = vmatpush1.bf16.msra.mxu0 %v568_v9  ;;  %550 = vmatpush1.bf16.msra.mxu1 %v568_v9 }
  0x26   : > { %328 = vmatprep.subr.bf16.mxu0 %v591_v1  ;;  %542 = vmatprep.subr.bf16.mxu1 %v591_v1 }
  0x29   : > { %329 = vmatpush1.bf16.msra.mxu0 %v569_v10  ;;  %551 = vmatpush1.bf16.msra.mxu1 %v569_v10 }
  0x2a   : > { %344 = vmatprep.subr.bf16.mxu0 %v591_v1  ;;  %543 = vmatprep.subr.bf16.mxu1 %v591_v1 }
  0x2d   : > { %345 = vmatpush2.bf16.msra.mxu0 %v570_v11  ;;  %552 = vmatpush2.bf16.msra.mxu1 %v570_v11 }
  0x30   : > { %347 = vmatmul.mubr.bf16.vlgmr.msra.gmra.mxu0 %v571_v12  ;;  %363 = vmatmul.mubr.bf16.vlgmr.msra.gmra.mxu1 %v574_v13 }
  0x31   : > { %513 = vmatprep.mubr.msk.bf16.mxu0 %vm301_vm0, %v577_v14  ;;  %515 = vmatprep.mubr.msk.bf16.mxu1 %vm301_vm0, %v579_v15 }
  0x38   : > { %355 = vmatmul.mubr.bf16.gmra.mxu0 %v581_v16  ;;  %371 = vmatmul.mubr.bf16.gmra.mxu1 %v582_v17 }
  0xf0   : > { %v348_v19 = vpop.f32.mrf.mxu0  ;;  %v364_v20 = vpop.f32.mrf.mxu1 }
  0xf1   : > { %v349_v21 = vadd.f32 %v494_v18, %v348_v19  ;;  %v365_v22 = vadd.f32 %v494_v18, %v364_v20 }
  0xf2   : > { %v350_v23 = vpop.f32.mrf.mxu0  ;;  %v366_v24 = vpop.f32.mrf.mxu1 }
  0xf3   : > { %v379_v25 = vmax.f32 %v349_v21, 0.0  ;;  %v383_v26 = vmax.f32 %v365_v22, 0.0 }
  0xf4   : > { %v351_v27 = vpop.f32.mrf.mxu0  ;;  %v367_v28 = vpop.f32.mrf.mxu1 }
  0xf5   : > { %v527_v29 = vpack.c.bf16 %v379_v25, %v379_v25  ;;  %v531_v30 = vpack.c.bf16 %v383_v26, %v383_v26  ;;  %v352_v31 = vadd.f32 %v494_v18, %v351_v27  ;;  %v368_v32 = vadd.f32 %v494_v18, %v367_v28 }
  0xf6   : > { %v353_v33 = vpop.f32.mrf.mxu0  ;;  %v369_v34 = vpop.f32.mrf.mxu1 }
  0xf7   : > { %420 = vst.msk [vmem:[%s674_s17] sm:$0xf] %vm419_vm1, %v527_v29  ;;  %424 = vst.msk [vmem:[%s674_s17 + $0x10] sm:$0xf] %vm419_vm1, %v531_v30  ;;  %v380_v35 = vmax.f32 %v352_v31, 0.0  ;;  %v384_v36 = vmax.f32 %v368_v32, 0.0 }
  0xf8   : > { %v356_v37 = vpop.f32.mrf.mxu0  ;;  %v372_v38 = vpop.f32.mrf.mxu1 }
  0xf9   : > { %v528_v39 = vpack.c.bf16 %v380_v35, %v380_v35  ;;  %v532_v40 = vpack.c.bf16 %v384_v36, %v384_v36  ;;  %v357_v41 = vadd.f32 %v494_v18, %v356_v37  ;;  %v373_v42 = vadd.f32 %v494_v18, %v372_v38 }
  0xfa   : > { %v358_v43 = vpop.f32.mrf.mxu0  ;;  %v374_v44 = vpop.f32.mrf.mxu1 }
  0xfb   : > { %421 = vst.msk [vmem:[%s674_s17 + $0x4] sm:$0xf] %vm419_vm1, %v528_v39  ;;  %425 = vst.msk [vmem:[%s674_s17 + $0x14] sm:$0xf] %vm419_vm1, %v532_v40  ;;  %v381_v45 = vmax.f32 %v357_v41, 0.0  ;;  %v385_v46 = vmax.f32 %v373_v42, 0.0 }
  0xfc   : > { %v359_v47 = vpop.f32.mrf.mxu0  ;;  %v375_v48 = vpop.f32.mrf.mxu1 }
  0xfd   : > { %v529_v49 = vpack.c.bf16 %v381_v45, %v381_v45  ;;  %v533_v50 = vpack.c.bf16 %v385_v46, %v385_v46  ;;  %v360_v51 = vadd.f32 %v494_v18, %v359_v47  ;;  %v376_v52 = vadd.f32 %v494_v18, %v375_v48 }
  0xfe   : > { %v361_v53 = vpop.f32.mrf.mxu0  ;;  %v377_v54 = vpop.f32.mrf.mxu1 }
  0xff   : > { %422 = vst.msk [vmem:[%s674_s17 + $0x8] sm:$0xf] %vm419_vm1, %v529_v49  ;;  %426 = vst.msk [vmem:[%s674_s17 + $0x18] sm:$0xf] %vm419_vm1, %v533_v50  ;;  %v382_v55 = vmax.f32 %v360_v51, 0.0  ;;  %v386_v56 = vmax.f32 %v376_v52, 0.0 }
 0x101   : > { %v530_v57 = vpack.c.bf16 %v382_v55, %v382_v55  ;;  %v534_v58 = vpack.c.bf16 %v386_v56, %v386_v56 }
 0x103   : > { %423 = vst.msk [vmem:[%s674_s17 + $0xc] sm:$0xf] %vm419_vm1, %v530_v57  ;;  %427 = vst.msk [vmem:[%s674_s17 + $0x1c] sm:$0xf] %vm419_vm1, %v534_v58 }
 0x104 PF: > { %s13_s12 = sadd.s32 1, %s589_s12  }
 0x105   : > { %p10_p4 = scmp.ge.s32.totalorder %s13_s12, 4  }
 0x107   :  { %12 = sbr.rel (!%p10_p4) target bundleno = 1 (0x1), region = 62 }

</bundles_post_ra>
